<compile_context>
chip_gen: v5e
topology: v5e:2x2
jax: 0.10.0
libtpu: 0.0.40
codegen_flags: <defaults>
</compile_context>

<pallas_src>
import functools

import jax
import jax.numpy as jnp
from jax.experimental import pallas as pl
from jax.experimental.pallas import tpu as pltpu

L_IN = 25     # conv1 input length
L_POOL = 13   # length after MaxPool1d(kernel_size=1, stride=2); matches Linear(13, 1)
C1 = 10       # conv1/conv2 out channels
NCLS = 2      # Linear(10, 2) outputs


def _net_kernel(x_ref, w_ref, db_ref, out_ref):
    # x_ref : (13, bt)  strided+transposed inputs: length on sublanes, batch on lanes
    # w_ref : (13, 1)   folded length weights, already scaled by (A1 - A0)
    # db_ref: (1,)      SMEM scalar: folded bias difference (B1 - B0)
    # out_ref: (2, bt)  lane-dense probabilities; row 0 = P(class0), row 1 = P(class1)
    # d[b] = sum_j w[j] * x[j, b] + dB    (VPU mul + sublane reduce; batch stays lane-dense)
    d = jnp.sum(x_ref[...] * w_ref[...], axis=0, keepdims=True) + db_ref[0]   # (1, bt)
    # 2-class softmax == sigmoid of the logit difference (exact identity, single exp).
    e = jnp.exp(-d)
    p1 = pl.reciprocal(1.0 + e, approx=False)   # approx=True OK if ~1e-3 accuracy suffices
    out_ref[0:1, :] = 1.0 - p1
    out_ref[1:2, :] = p1


def _fold_params(params):
    """Fold conv1 -> pool1 -> conv2 -> lin1 -> lin2 -> (softmax as sigmoid) on the host."""
    w1 = params["conv1_w"].reshape(C1).astype(jnp.float32)          # (10,)
    b1 = params["conv1_b"].astype(jnp.float32)                      # (10,)
    w2 = params["conv2_w"].reshape(C1, C1).astype(jnp.float32)      # (10,10) [out, in]
    b2 = params["conv2_b"].astype(jnp.float32)                      # (10,)
    wl1 = params["lin1_w"].reshape(L_POOL).astype(jnp.float32)      # (13,)
    bl1 = params["lin1_b"].reshape(()).astype(jnp.float32)          # ()
    wl2 = params["lin2_w"].astype(jnp.float32)                      # (2,10)
    bl2 = params["lin2_b"].astype(jnp.float32)                      # (2,)

    # conv2(conv1(x)) = a[o]*x + c[o]   (both convs are kernel_size=1)
    a = w2 @ w1                                                     # (10,)
    c = w2 @ b1 + b2                                                # (10,)
    # lin1 over length (S = sum_j wl1[j]*x[2j]), then lin2 over channels:
    A = wl2 @ a                                                     # (2,)  per-class scale on S
    Bv = wl2 @ (c * jnp.sum(wl1) + bl1) + bl2                       # (2,)  per-class offset
    # softmax over 2 classes == sigmoid(z1 - z0): fold the class difference.
    dA = A[1] - A[0]
    dB = Bv[1] - Bv[0]
    w_col = (wl1 * dA).reshape(L_POOL, 1)                           # (13,1) VMEM weights
    db = jnp.reshape(dB, (1,))                                      # (1,)   SMEM scalar
    return w_col, db


def _round_up(n, m):
    return ((n + m - 1) // m) * m


def _pick_bt(B, b_tile):
    """Rows (lanes) per grid step. Single block for tiny B; otherwise a 128-aligned tile
    giving >= 2 grid steps so ("parallel",) sharding feeds both v7x TensorCores."""
    b_tile = max(128, _round_up(int(b_tile), 128))
    if B <= 256:
        return B                      # block dims equal full array dims -> always legal
    return min(b_tile, _round_up(pl.cdiv(B, 2), 128))


@functools.partial(jax.jit, static_argnames=("b_tile",))
def net_forward(x, params, *, b_tile=32768):
    """x: (B, 1, 25) float32 (PyTorch NCL). Returns (B, 2) softmax probabilities."""
    B = x.shape[0]
    # One-time repack: apply the stride-2 "pool" and put the batch on the lane axis.
    xT = x.reshape(B, L_IN)[:, ::2].T.astype(jnp.float32)           # (13, B)
    w_col, db = _fold_params(params)

    bt = _pick_bt(B, b_tile)
    grid = (pl.cdiv(B, bt),)                                        # ragged tail handled by Pallas

    outT = pl.pallas_call(
        _net_kernel,
        out_shape=jax.ShapeDtypeStruct((NCLS, B), jnp.float32),
        grid_spec=pltpu.PrefetchScalarGridSpec(
            num_scalar_prefetch=0,
            grid=grid,
            in_specs=[
                pl.BlockSpec((L_POOL, bt), lambda i: (0, i)),            # input batch tile
                pl.BlockSpec((L_POOL, 1), lambda i: (0, 0)),             # folded weights (constant)
                pl.BlockSpec(memory_space=pltpu.MemorySpace.SMEM),       # folded bias scalar
            ],
            out_specs=pl.BlockSpec((NCLS, bt), lambda i: (0, i)),        # lane-dense output tile
        ),
        compiler_params=pltpu.CompilerParams(
            dimension_semantics=("parallel",)),                          # megacore sharding on v7x
    )(xT, w_col, db)

    return outT.T                                                    # (B, 2)


def net_reference(x, params):
    """Pure-JAX reference mirroring the PyTorch forward exactly (f32, no folding)."""
    w1, b1 = params["conv1_w"], params["conv1_b"]
    h = x[:, 0, :][:, None, :] * w1[:, 0, 0][None, :, None] + b1[None, :, None]  # (B,10,25)
    h = h[:, :, ::2]                                                              # pool1 -> (B,10,13)
    w2, b2 = params["conv2_w"][:, :, 0], params["conv2_b"]
    h = jnp.einsum("oc,bcl->bol", w2, h) + b2[None, :, None]                      # (B,10,13)
    # pool2 (k=1, stride=1) is the identity
    y = jnp.einsum("bcl,l->bc", h, params["lin1_w"][0]) + params["lin1_b"][0]     # (B,10)
    z = y @ params["lin2_w"].T + params["lin2_b"]                                 # (B,2)
    return jax.nn.softmax(z, axis=1)


def init_params(key):
    ks = jax.random.split(key, 8)
    scale = 0.3
    return {
        "conv1_w": scale * jax.random.normal(ks[0], (C1, 1, 1), jnp.float32),
        "conv1_b": scale * jax.random.normal(ks[1], (C1,), jnp.float32),
        "conv2_w": scale * jax.random.normal(ks[2], (C1, C1, 1), jnp.float32),
        "conv2_b": scale * jax.random.normal(ks[3], (C1,), jnp.float32),
        "lin1_w": scale * jax.random.normal(ks[4], (1, L_POOL), jnp.float32),
        "lin1_b": scale * jax.random.normal(ks[5], (1,), jnp.float32),
        "lin2_w": scale * jax.random.normal(ks[6], (NCLS, C1), jnp.float32),
        "lin2_b": scale * jax.random.normal(ks[7], (NCLS,), jnp.float32),
    }


if __name__ == "__main__":
    key = jax.random.PRNGKey(0)
    pkey, xkey = jax.random.split(key)
    params = init_params(pkey)

    # Small demo shape consistent with the module: (B=2, C=1, L=25).
    B = 2
    x = jax.random.normal(xkey, (B, 1, L_IN), jnp.float32)

    out = jax.block_until_ready(net_forward(x, params))
    ref = jax.block_until_ready(net_reference(x, params))

    assert out.shape == (B, NCLS), out.shape
    assert jnp.allclose(out, ref, rtol=1e-4, atol=1e-5), (out, ref)
    assert jnp.allclose(jnp.sum(out, axis=-1), 1.0, atol=1e-5)

    # Also exercise the multi-step grid with a ragged last block (no host padding).
    Bbig = 2051
    xbig = jax.random.normal(jax.random.PRNGKey(1), (Bbig, 1, L_IN), jnp.float32)
    out_big = jax.block_until_ready(net_forward(xbig, params))
    ref_big = jax.block_until_ready(net_reference(xbig, params))
    assert out_big.shape == (Bbig, NCLS)
    assert jnp.allclose(out_big, ref_big, rtol=1e-4, atol=1e-5)
    assert jnp.allclose(jnp.sum(out_big, axis=-1), 1.0, atol=1e-5)

    print("KERNEL_OK")
</pallas_src>

<mosaic_0001>
module attributes {stable_mosaic.version = 11 : i64} {
  func.func @_net_kernel(%arg0: i32, %arg1: memref<13x2xf32, #tpu.memory_space<vmem>>, %arg2: memref<13x1xf32, #tpu.memory_space<vmem>>, %arg3: memref<1xf32, #tpu.memory_space<smem>>, %arg4: memref<2x2xf32, #tpu.memory_space<vmem>>) attributes {dimension_semantics = [#tpu.dimension_semantics<parallel>], iteration_bounds = array<i64: 1>, scalar_prefetch = 0 : i64, scratch_operands = 0 : i64, tpu.core_type = #tpu.core_type<tc>, window_params = [{transform_indices = @transform_0, window_bounds = array<i64: 13, 2>}, {pipeline_mode = #tpu.pipeline_mode<synchronous>, transform_indices = @transform_1, window_bounds = array<i64: 13, 1>}, {transform_indices = @transform_2, window_bounds = array<i64: 1>}, {transform_indices = @transform_3, window_bounds = array<i64: 2, 2>}]} {
    %c0 = arith.constant 0 : index
    %c0_0 = arith.constant 0 : index
    %0 = vector.load %arg1[%c0, %c0_0] : memref<13x2xf32, #tpu.memory_space<vmem>>, vector<13x2xf32>
    %c0_1 = arith.constant 0 : index
    %c0_2 = arith.constant 0 : index
    %1 = vector.load %arg2[%c0_1, %c0_2] : memref<13x1xf32, #tpu.memory_space<vmem>>, vector<13x1xf32>
    %2 = vector.broadcast %1 : vector<13x1xf32> to vector<13x2xf32>
    %3 = arith.mulf %0, %2 : vector<13x2xf32>
    %cst = arith.constant dense<0.000000e+00> : vector<2xf32>
    %4 = vector.multi_reduction <add>, %3, %cst [0] : vector<13x2xf32> to vector<2xf32>
    %5 = vector.shape_cast %4 : vector<2xf32> to vector<1x2xf32>
    %c0_3 = arith.constant 0 : index
    %6 = memref.load %arg3[%c0_3] : memref<1xf32, #tpu.memory_space<smem>>
    %7 = vector.broadcast %6 : f32 to vector<1x2xf32>
    %8 = arith.addf %5, %7 : vector<1x2xf32>
    %cst_4 = arith.constant 0.000000e+00 : f32
    %9 = vector.broadcast %cst_4 : f32 to vector<1x2xf32>
    %10 = arith.subf %9, %8 : vector<1x2xf32>
    %11 = math.exp %10 : vector<1x2xf32>
    %cst_5 = arith.constant 1.000000e+00 : f32
    %12 = vector.broadcast %cst_5 : f32 to vector<1x2xf32>
    %13 = arith.addf %12, %11 : vector<1x2xf32>
    %14 = tpu.reciprocal %13 : vector<1x2xf32> -> vector<1x2xf32>
    %cst_6 = arith.constant 1.000000e+00 : f32
    %15 = vector.broadcast %cst_6 : f32 to vector<1x2xf32>
    %16 = arith.subf %15, %14 : vector<1x2xf32>
    %c0_7 = arith.constant 0 : index
    %c0_8 = arith.constant 0 : index
    %17 = vector.load %arg4[%c0_7, %c0_8] : memref<2x2xf32, #tpu.memory_space<vmem>>, vector<1x2xf32>
    tpu.vector_store %arg4[%c0_7, %c0_8], %16 {strides = array<i32>} : memref<2x2xf32, #tpu.memory_space<vmem>>, vector<1x2xf32>,
    %c1 = arith.constant 1 : index
    %c0_9 = arith.constant 0 : index
    %18 = vector.load %arg4[%c1, %c0_9] : memref<2x2xf32, #tpu.memory_space<vmem>>, vector<1x2xf32>
    tpu.vector_store %arg4[%c1, %c0_9], %14 {strides = array<i32>} : memref<2x2xf32, #tpu.memory_space<vmem>>, vector<1x2xf32>,
    return
  }
  func.func @transform_0(%arg0: i32) -> (i32, i32) {
    %c0_i32 = arith.constant 0 : i32
    %c0_i32_0 = arith.constant 0 : i32
    return %c0_i32, %arg0 : i32, i32
  }
  func.func @transform_1(%arg0: i32) -> (i32, i32) {
    %c0_i32 = arith.constant 0 : i32
    %c0_i32_0 = arith.constant 0 : i32
    %c0_i32_1 = arith.constant 0 : i32
    return %c0_i32, %c0_i32_0 : i32, i32
  }
  func.func @transform_2(%arg0: i32) -> i32 {
    %c0_i32 = arith.constant 0 : i32
    %c0_i32_0 = arith.constant 0 : i32
    return %c0_i32 : i32
  }
  func.func @transform_3(%arg0: i32) -> (i32, i32) {
    %c0_i32 = arith.constant 0 : i32
    %c0_i32_0 = arith.constant 0 : i32
    return %c0_i32, %arg0 : i32, i32
  }
}

</mosaic_0001>

<bundles_post_ra>
// kernel: net_forward.1
= control target key start
LH: loop header
LB: loop body
LE: loop exit
PB: predicated region body
PF: predicated region fallthrough
CT: control target
= control target key end

     0   :  { %v77_v0 = vmov 0   ;;  %vm31_vm0 = vcmask 15360   ;;  %vm33_vm1 = vcmask 12288   ;;  %vm64_vm4 = vcmask 8192   ;;  %s119_s1 = inlined_call_operand.vmem [shape: f32[13,1], index: 1, kind: input, shape index: {}]   ;;  %s120_s0 = inlined_call_operand.vmem [shape: f32[13,2], index: 0, kind: input, shape index: {}]   ;;  %s121_s2 = inlined_call_operand.<no memory space> [shape: f32[1], index: 2, kind: input, shape index: {}]   ;;  %s122_s3 = inlined_call_operand.vmem [shape: f32[2,2], index: 3, kind: output, shape index: {}]  }
   0x1   :  { %72 = vset.pattern.permute.xlu0 %v77_v0  ;;  %v17_v1 = vld [vmem:[%s119_s1] sm:$0xff]  ;;  %v18_v2 = vld [vmem:[%s119_s1 + $0x8] sm:$0x1f]  ;;  %v43_v17 = vstv %s121_s2 }
   0x2   :  { %21 = vperm.xlu0 %72, %v17_v1   ;;  %v15_v4 = vld [vmem:[%s120_s0] sm:$0xff]  ;;  %v16_v5 = vld [vmem:[%s120_s0 + $0x8] sm:$0x1f] }
   0xa   :  { %26 = vperm.xlu0 %72, %v18_v2  }
  0x74   :  { %v22_v3 = vpop.permute.xlu0 %21 }
  0x75   :  { %v29_v6 = vmul.f32 %v22_v3, %v15_v4 }
  0x77   :  { %v32_v9 = vsel %vm31_vm0, %v29_v6, 0.0 }
  0x7c   :  { %v27_v7 = vpop.permute.xlu0 %26 }
  0x7d   :  { %v30_v8 = vmul.f32 %v27_v7, %v16_v5 }
  0x7f   :  { %v34_v10 = vsel %vm33_vm1, %v30_v8, 0.0 }
  0x80   :  { %v35_v11 = vadd.f32 %v34_v10, %v32_v9 }
  0x82   :  { %v36_v12 = vrot.slane %v35_v11, 4 }
  0x84   :  { %v37_v13 = vadd.f32 %v36_v12, %v35_v11 }
  0x86   :  { %v38_v14 = vrot.slane %v37_v13, 2 }
  0x88   :  { %v39_v15 = vadd.f32 %v38_v14, %v37_v13 }
  0x8a   :  { %v40_v16 = vrot.slane %v39_v15, 1 }
  0x8c   :  { %v41_v18 = vadd.f32 %v40_v16, %v39_v15 }
  0x8e   :  { %v44_v19 = vadd.f32 %v43_v17, %v41_v18 }
  0x90   :  { %v45_v20 = vsub.f32 0.0, %v44_v19 }
  0x92   :  { %v46_v21 = vmul.f32 1.442695, %v45_v20 }
  0x94   :  { %73 = vpow2.f32 %v46_v21 }
  0x9a   :  { %v74_v22 = vpop.eup %73 }
  0x9b   :  { %v48_v23 = vadd.f32 1.0, %v74_v22 }
  0x9d   :  { %75 = vrcp.f32 %v48_v23  ;;  %v60_v27 = vand.u32 2147483648, %v48_v23  ;;  %v58_v29 = vand.u32 2147483647, %v48_v23  ;;  %vm54_vm3 = vweird.f32 %v48_v23 }
  0x9f   :  { %v61_v31 = vor.u32 1.1754944e-38, %v60_v27  ;;  %vm59_vm6 = vcmp.eq.f32.partialorder %v58_v29, 8.507059e+37 }
  0xa3   :  { %v76_v24 = vpop.eup %75 }
  0xa4   :  { %v50_v25 = vmul.f32 %v76_v24, %v48_v23  ;;  %vm55_vm2 = vweird.f32 %v76_v24 }
  0xa5   :  { %vm56_vm5 = vmor %vm54_vm3, %vm55_vm2 }
  0xa6   :  { %v51_v26 = vsub.f32 1.0, %v50_v25 }
  0xa8   :  { %v52_v28 = vmul.f32 %v76_v24, %v51_v26 }
  0xaa   :  { %v53_v30 = vadd.f32 %v76_v24, %v52_v28 }
  0xac   :  { %v57_v32 = vsel %vm56_vm5, %v76_v24, %v53_v30 }
  0xad   :  { %v62_v33 = vsel %vm59_vm6, %v61_v31, %v57_v32 }
  0xae   :  { %v63_v34 = vsub.f32 1.0, %v62_v33  ;;  %66 = vst.msk [vmem:[%s122_s3 + $0x1] sm:$0x1] %vm64_vm4, %v62_v33 }
  0xb0   :  { %65 = vst.msk [vmem:[%s122_s3] sm:$0x1] %vm64_vm4, %v63_v34 }

</bundles_post_ra>
